<compile_context>
chip_gen: v6e
topology: v6e:2x2x1
jax: 0.10.0
libtpu: 0.0.40
codegen_flags: <defaults>
</compile_context>

<pallas_src>
import jax
import jax.numpy as jnp
from jax import lax
from jax.experimental import pallas as pl
from jax.experimental.pallas import tpu as pltpu


# ---------------------------------------------------------------------------
# Kernels
# ---------------------------------------------------------------------------

def _linear_kernel(x_ref, w_ref, b_ref, o_ref):
    """General num_classes path.

    x_ref: (TM, H) activation tile     (pipelined over the grid)
    w_ref: (C, H)  weight, PyTorch layout (resident)
    b_ref: (1, C)  bias                   (resident)
    o_ref: (TM, C) output tile
    """
    acc = lax.dot_general(
        x_ref[...], w_ref[...],
        dimension_numbers=(((1,), (1,)), ((), ())),  # contract on H (last axis of both)
        preferred_element_type=jnp.float32)
    o_ref[...] = (acc + b_ref[...].astype(jnp.float32)).astype(o_ref.dtype)


def _rowdot_kernel(x_ref, w_ref, b_ref, o_ref):
    """num_classes == 1 path: VPU multiply + lane reduce, lane-dense 1-D output.

    x_ref: (TM, H); w_ref: (1, H); b_ref: (1, 1) scalar in SMEM; o_ref: (TM,)
    """
    prod = x_ref[...].astype(jnp.float32) * w_ref[...].astype(jnp.float32)
    o_ref[...] = (jnp.sum(prod, axis=-1) + b_ref[0, 0]).astype(o_ref.dtype)


# ---------------------------------------------------------------------------
# Tile-size selection (v7x-safe VMEM budget)
# ---------------------------------------------------------------------------

def _pick_tile_m(M, H, C, in_itemsize, out_itemsize,
                 vmem_budget_bytes=24 * 1024 * 1024):
    """Largest M-tile whose double-buffered traffic fits a v7x-safe VMEM budget."""
    if M <= 128:
        return M  # single full-extent block (always layout-legal)
    resident = C * H * in_itemsize + 1024  # weight + (padded) bias
    for tm in (2048, 1024, 512, 256, 128):
        if tm > M:
            continue
        need = (2 * tm * H * in_itemsize          # double-buffered activation tiles
                + 2 * tm * max(C, 1) * out_itemsize  # double-buffered output tiles
                + resident)
        if need <= vmem_budget_bytes:
            return tm
    return 128


# ---------------------------------------------------------------------------
# Wrapper
# ---------------------------------------------------------------------------

def pooler_start_logits(hidden_states, weight, bias, p_mask=None):
    """hidden_states: [B, S, H]; weight: [C, H] (PyTorch layout); bias: [C].

    Returns logits of shape [B, S, C].  p_mask is accepted but unused, matching
    the reference module's forward.
    """
    del p_mask  # unused by the reference forward
    B, S, H = hidden_states.shape
    C = weight.shape[0]
    M = B * S
    out_dtype = hidden_states.dtype

    x2d = hidden_states.reshape(M, H)  # glue reshape in plain JAX
    tm = _pick_tile_m(M, H, C,
                      jnp.dtype(x2d.dtype).itemsize,
                      jnp.dtype(out_dtype).itemsize)
    grid = (pl.cdiv(M, tm),)

    if C == 1:
        # Lane-dense formulation: output is 1-D with M on the lane axis, so
        # stores are unmasked 128-lane writes and the 1-column RHS never hits
        # the MXU.
        b_smem = bias.reshape(1, 1).astype(jnp.float32)
        out = pl.pallas_call(
            _rowdot_kernel,
            out_shape=jax.ShapeDtypeStruct((M,), out_dtype),
            grid_spec=pltpu.PrefetchScalarGridSpec(
                num_scalar_prefetch=0,
                grid=grid,
                in_specs=[
                    pl.BlockSpec((tm, H), lambda i: (i, 0)),            # activations (pipelined)
                    pl.BlockSpec((1, H), lambda i: (0, 0)),             # weight row (resident)
                    pl.BlockSpec(memory_space=pltpu.MemorySpace.SMEM),  # scalar bias
                ],
                out_specs=pl.BlockSpec((tm,), lambda i: (i,)),
            ),
            compiler_params=pltpu.CompilerParams(
                dimension_semantics=("parallel",)),
        )(x2d, weight, b_smem)
        return out.reshape(B, S, 1)

    b2d = bias.reshape(1, C)
    out = pl.pallas_call(
        _linear_kernel,
        out_shape=jax.ShapeDtypeStruct((M, C), out_dtype),
        grid_spec=pltpu.PrefetchScalarGridSpec(
            num_scalar_prefetch=0,
            grid=grid,
            in_specs=[
                pl.BlockSpec((tm, H), lambda i: (i, 0)),  # activations (pipelined)
                pl.BlockSpec((C, H), lambda i: (0, 0)),   # weight, PyTorch layout (resident)
                pl.BlockSpec((1, C), lambda i: (0, 0)),   # bias (resident)
            ],
            out_specs=pl.BlockSpec((tm, C), lambda i: (i, 0)),
        ),
        compiler_params=pltpu.CompilerParams(
            dimension_semantics=("parallel",)),
    )(x2d, weight, b2d)
    return out.reshape(B, S, C)


# ---------------------------------------------------------------------------
# Demo / correctness check
# ---------------------------------------------------------------------------

if __name__ == "__main__":
    # Small shapes implied by the module: batch=2, seq=8, hidden=32, classes=4.
    B, S, H, C = 2, 8, 32, 4

    key = jax.random.PRNGKey(0)
    k_x, k_w, k_b = jax.random.split(key, 3)

    hidden_states = jax.random.normal(k_x, (B, S, H), dtype=jnp.float32)
    # PyTorch nn.Linear parameter shapes: weight [C, H], bias [C].
    weight = jax.random.normal(k_w, (C, H), dtype=jnp.float32) * 0.02
    bias = jax.random.normal(k_b, (C,), dtype=jnp.float32) * 0.02

    # General num_classes path.
    logits = pooler_start_logits(hidden_states, weight, bias)
    jax.block_until_ready(logits)
    ref = hidden_states @ weight.T + bias
    assert logits.shape == (B, S, C)
    assert jnp.allclose(logits, ref, atol=1e-5, rtol=1e-5)

    # num_classes == 1 (lane-dense row-reduction) path.
    w1, b1 = weight[:1], bias[:1]
    logits1 = pooler_start_logits(hidden_states, w1, b1)
    jax.block_until_ready(logits1)
    ref1 = hidden_states @ w1.T + b1
    assert logits1.shape == (B, S, 1)
    assert jnp.allclose(logits1, ref1, atol=1e-5, rtol=1e-5)

    print("KERNEL_OK")
</pallas_src>

<mosaic_0001>
module attributes {stable_mosaic.version = 11 : i64} {
  func.func @_linear_kernel(%arg0: i32, %arg1: memref<16x32xf32, #tpu.memory_space<vmem>>, %arg2: memref<4x32xf32, #tpu.memory_space<vmem>>, %arg3: memref<1x4xf32, #tpu.memory_space<vmem>>, %arg4: memref<16x4xf32, #tpu.memory_space<vmem>>) attributes {dimension_semantics = [#tpu.dimension_semantics<parallel>], iteration_bounds = array<i64: 1>, scalar_prefetch = 0 : i64, scratch_operands = 0 : i64, tpu.core_type = #tpu.core_type<tc>, window_params = [{transform_indices = @transform_0, window_bounds = array<i64: 16, 32>}, {pipeline_mode = #tpu.pipeline_mode<synchronous>, transform_indices = @transform_1, window_bounds = array<i64: 4, 32>}, {pipeline_mode = #tpu.pipeline_mode<synchronous>, transform_indices = @transform_2, window_bounds = array<i64: 1, 4>}, {transform_indices = @transform_3, window_bounds = array<i64: 16, 4>}]} {
    %c0 = arith.constant 0 : index
    %c0_0 = arith.constant 0 : index
    %0 = vector.load %arg1[%c0, %c0_0] : memref<16x32xf32, #tpu.memory_space<vmem>>, vector<16x32xf32>
    %c0_1 = arith.constant 0 : index
    %c0_2 = arith.constant 0 : index
    %1 = vector.load %arg2[%c0_1, %c0_2] : memref<4x32xf32, #tpu.memory_space<vmem>>, vector<4x32xf32>
    %cst = arith.constant dense<0.000000e+00> : vector<16x4xf32>
    %2 = tpu.matmul %0, %1, %cst {dimension_numbers = #tpu.dot_dimension_numbers<[1], [1], [0], [0], [0, 0, 1, 0], [], []>} : vector<16x32xf32>, vector<4x32xf32>, vector<16x4xf32> -> vector<16x4xf32>
    %c0_3 = arith.constant 0 : index
    %c0_4 = arith.constant 0 : index
    %3 = vector.load %arg3[%c0_3, %c0_4] : memref<1x4xf32, #tpu.memory_space<vmem>>, vector<1x4xf32>
    %4 = vector.broadcast %3 : vector<1x4xf32> to vector<16x4xf32>
    %5 = arith.addf %2, %4 : vector<16x4xf32>
    %c0_5 = arith.constant 0 : index
    %c0_6 = arith.constant 0 : index
    %6 = vector.load %arg4[%c0_5, %c0_6] : memref<16x4xf32, #tpu.memory_space<vmem>>, vector<16x4xf32>
    tpu.vector_store %arg4[%c0_5, %c0_6], %5 {strides = array<i32>} : memref<16x4xf32, #tpu.memory_space<vmem>>, vector<16x4xf32>,
    return
  }
  func.func @transform_0(%arg0: i32) -> (i32, i32) {
    %c0_i32 = arith.constant 0 : i32
    %c0_i32_0 = arith.constant 0 : i32
    return %arg0, %c0_i32 : i32, i32
  }
  func.func @transform_1(%arg0: i32) -> (i32, i32) {
    %c0_i32 = arith.constant 0 : i32
    %c0_i32_0 = arith.constant 0 : i32
    %c0_i32_1 = arith.constant 0 : i32
    return %c0_i32, %c0_i32_0 : i32, i32
  }
  func.func @transform_2(%arg0: i32) -> (i32, i32) {
    %c0_i32 = arith.constant 0 : i32
    %c0_i32_0 = arith.constant 0 : i32
    %c0_i32_1 = arith.constant 0 : i32
    return %c0_i32, %c0_i32_0 : i32, i32
  }
  func.func @transform_3(%arg0: i32) -> (i32, i32) {
    %c0_i32 = arith.constant 0 : i32
    %c0_i32_0 = arith.constant 0 : i32
    return %arg0, %c0_i32 : i32, i32
  }
}

</mosaic_0001>

<bundles_post_ra>
// kernel: tpu_custom_call.1
= control target key start
LH: loop header
LB: loop body
LE: loop exit
PB: predicated region body
PF: predicated region fallthrough
CT: control target
= control target key end

     0   :  { %8 = vsyncpa [#allocation3], 0  ;;  %s243_s0 = inlined_call_operand.hbm [shape: f32[16,32], index: 0, kind: input, shape index: {}]   ;;  %s244_s1 = inlined_call_operand.hbm [shape: f32[4,32], index: 1, kind: input, shape index: {}]   ;;  %s245_s2 = inlined_call_operand.vmem [shape: f32[1,4], index: 2, kind: input, shape index: {}]   ;;  %s246_s3 = inlined_call_operand.vmem [shape: f32[16,4], index: 3, kind: output, shape index: {}]  }
   0x1   :  { %9 = vsyncpa [#allocation5], 0  ;;  %s204_s12 = smov [#allocation2]  }
   0x2   :  { %s15_s13 = sshll.u32 %s204_s12, 4  ;;  %s16_s13 = int_to_ptr.vmem [resolvable:$true] %s15_s13 }
   0x3   :  { %s168_s14 = scalar_lea.vmem %s16_s13, 256  ;;  %p173_p1 = scmp.lt.s32.totalorder %s16_s13, %s16_s13 }
   0x4   :  { %p169_p0 = scmp.ne.s32.totalorder %s16_s13, %s168_s14  ;;  %p174_p2 = scmp.lt.s32.totalorder %s168_s14, %s168_s14 }
   0x6   :  { %p175_p3 = por %p174_p2, %p173_p1 }
   0x8   :  { %p176_p4 = pnand %p175_p3, %p169_p0 }
   0xa   :  { %179 = shalt.err (!%p176_p4)
}
   0xb   :  { %s205_s15 = smov 128   ;;  %s206_s16 = smov 8  }
   0xc   :  { %21 = dma.hbm_to_vmem [thread:$0]  %s243_s0, 256, %s16_s13, [#allocation3], %s205_s15, %s205_s15, %s206_s16  }
   0xd   :  { %s207_s19 = smov [#allocation4]  }
   0xe   :  { %s28_s20 = sshll.u32 %s207_s19, 4  ;;  %s29_s20 = int_to_ptr.vmem [resolvable:$true] %s28_s20 }
   0xf   :  { %s188_s21 = scalar_lea.vmem %s29_s20, 64  ;;  %p193_p6 = scmp.lt.s32.totalorder %s29_s20, %s29_s20 }
  0x10   :  { %p189_p5 = scmp.ne.s32.totalorder %s29_s20, %s188_s21  ;;  %p194_p7 = scmp.lt.s32.totalorder %s188_s21, %s188_s21 }
  0x12   :  { %p195_p8 = por %p194_p7, %p193_p6 }
  0x14   :  { %p196_p9 = pnand %p195_p8, %p189_p5 }
  0x16   :  { %199 = shalt.err (!%p196_p9)
}
  0x17   :  { %31 = dma.hbm_to_vmem [thread:$0]  %s244_s1, 64, %s29_s20, [#allocation5]  }
  0x18   :  { %200 = dma.done.wait [#allocation3], 256  }
  0x19   :  { %201 = vsyncadd [#allocation3], 4294967040 }
  0x1a   :  { %202 = dma.done.wait [#allocation5], 64  }
  0x1b   :  { %203 = vsyncadd [#allocation5], 4294967232  ;;  %vm50_vm0 = vcmask 261120   ;;  %v42_v0 = vld [vmem:[#allocation4] sm:$0xf]  ;;  %v40_v1 = vld [vmem:[#allocation2] sm:$0xff] }
  0x1c   :  { %151 = vmatprep.subr.msk.mxu0 %vm50_vm0, %v42_v0  ;;  %153 = vmatprep.mubr.msk.f32.mxu0 %vm50_vm0, %v40_v1  ;;  %v41_v2 = vld [vmem:[#allocation2 + $0x8] sm:$0xff]  ;;  %v144_v3 = vld [vmem:[%s245_s2] ss:$0 sm:$0xff]  ;;  %vm135_vm1 = vcmask 31744  }
  0x1d   :  { %152 = vmatpush3.xpose.msk.msra.mxu0 %vm50_vm0, %v42_v0 }
  0x20   :  { %154 = vmatmul.mubr.msk.f32.vlgmr.msra.gmra.mxu0 %vm50_vm0, %v41_v2 }
  0xe0   :  { %v155_v4 = vpop.f32.mrf.mxu0 }
  0xe1   :  { %v132_v5 = vadd.f32 %v155_v4, %v144_v3 }
  0xe2   :  { %v126_v6 = vpop.f32.mrf.mxu0 }
  0xe3   :  { %137 = vst.msk [vmem:[%s246_s3 + $0x8] sm:$0xff] %vm135_vm1, %v132_v5  ;;  %v127_v7 = vadd.f32 %v144_v3, %v126_v6 }
  0xe5   :  { %136 = vst.msk [vmem:[%s246_s3] sm:$0xff] %vm135_vm1, %v127_v7 }
  0xe6   :  { %142 = vsyncpa [#allocation3], 1 }
  0xe7   :  { %143 = vsyncpa [#allocation5], 1 }

</bundles_post_ra>
